<compile_context>
chip_gen: v7x
topology: tpu7x:2x2x1
jax: 0.10.0
libtpu: 0.0.40
codegen_flags: <defaults>
</compile_context>

<pallas_src>
import functools

import jax
import jax.numpy as jnp
from jax.experimental import pallas as pl
from jax.experimental.pallas import tpu as pltpu

IGNORE_LABEL = -1


def _num_core_slices():
    """TensorCores sharing one device's grid ("megacore").  1 is always safe."""
    try:
        kind = jax.devices()[0].device_kind.lower()
    except Exception:
        return 1
    if "lite" in kind:                       # "TPU v5 lite", "TPU v6 lite"
        return 1
    if "v2" in kind or "v3" in kind:
        return 1
    if "v4" in kind or "v5" in kind or "v7" in kind or "7x" in kind:
        return 2                             # megacore parts: 2 TCs per device
    return 1


def _vmem_capacity_bytes():
    try:
        cap = int(pltpu.get_tpu_info().vmem_capacity_bytes)
        if cap > 0:
            return cap
    except Exception:
        pass
    return 64 * 1024 * 1024                  # conservative (v7x-sized) fallback


def _pick_tile_rows(rows, width, itemsize, budget):
    """Largest row tile whose double-buffered, lane-padded working set fits."""
    lane_w = max(128, pl.cdiv(width, 128) * 128)
    per_row = (2 * lane_w * itemsize         # logits block, double-buffered
               + 2 * 128 * 4                 # int32 target block (lane-padded), x2
               + 4 * lane_w * 4)             # headroom for f32 temporaries in VMEM
    tile = int(budget // per_row)
    if tile >= rows:
        return rows                          # single block covering everything
    if tile >= 32:
        return (tile // 32) * 32             # keep bf16/int8 sublane groups whole
    return max(8, (tile // 8) * 8)


def _ppc_kernel(logits_ref, tgt_ref, out_ref, acc_ref, *,
                rows, tile_rows, num_slices, n_cls, fold_k):
    c = pl.program_id(0)                     # core slice (parallel)
    i = pl.program_id(1)                     # row-tile step within the slice
    inner = pl.num_programs(1)

    @pl.when(i == 0)
    def _init():
        acc_ref[...] = jnp.zeros_like(acc_ref)

    # Round-robin block ownership.  The index_map clamps the DMA of any step
    # past the last real block; such duplicates (and partial last blocks) are
    # masked out by the global row-id check below.
    block = i * num_slices + c
    row_ids = block * tile_rows + jax.lax.broadcasted_iota(
        jnp.int32, (tile_rows, 1), 0)
    in_range = row_ids < rows                                     # (TM, 1)

    x = logits_ref[...]                                           # (TM, W) native dtype

    if fold_k == 1:
        # ---- generic layout: one row per sublane, classes along lanes ----
        m = jnp.max(x, axis=-1, keepdims=True)                    # native dtype
        e = jnp.exp((x - m).astype(jnp.float32))
        lse = jnp.log(jnp.sum(e, axis=-1, keepdims=True)) + m.astype(jnp.float32)

        tgt = tgt_ref[...]                                        # (TM, 1) int32
        col = jax.lax.broadcasted_iota(jnp.int32, x.shape, 1)
        tgt_logit = jnp.sum(
            jnp.where(col == tgt, x, jnp.zeros_like(x)),
            axis=-1, keepdims=True).astype(jnp.float32)

        valid = jnp.logical_and(tgt != IGNORE_LABEL, in_range)    # (TM, 1)
        loss_step = jnp.sum(jnp.where(valid, lse - tgt_logit, 0.0))
        cnt_step = jnp.sum(valid.astype(jnp.float32))
    else:
        # ---- lane-folded layout: fold_k rows share one 128-lane row ----
        width = fold_k * n_cls                                    # == 128
        lane = jax.lax.broadcasted_iota(jnp.int32, (1, width), 1)

        def seg_allreduce(v, op):
            # XOR-butterfly all-reduce inside aligned segments of n_cls lanes
            # (n_cls is a power of two).  Direction-agnostic: a rolled lane
            # iota tells us which rotation delivered the xor-partner, so the
            # code is correct for either rotate convention of pltpu.roll.
            s = 1
            while s < n_cls:
                r1 = pltpu.roll(v, s, axis=1)
                r2 = pltpu.roll(v, width - s, axis=1)
                take1 = pltpu.roll(lane, s, axis=1) == (lane ^ s)  # (1, W)
                v = op(v, jnp.where(take1, r1, r2))
                s *= 2
            return v

        m = seg_allreduce(x, jnp.maximum)                         # per-segment max
        e = jnp.exp((x - m).astype(jnp.float32))                  # every lane useful
        sum_e = seg_allreduce(e, jnp.add)                         # per-segment sum
        lse = jnp.log(sum_e) + m.astype(jnp.float32)              # per-lane seg lse

        # tgt_ref holds fold_k int32 per packed row: the absolute target lane
        # (segment*n_cls + class) or -1 for ignored rows.
        enc = tgt_ref[...]                                        # (TM, fold_k)
        onehot = lane == enc[:, 0:1]
        for g in range(1, fold_k):
            onehot = jnp.logical_or(onehot, lane == enc[:, g:g + 1])
        # TODO(synk): a tiny (TM, fold_k) @ (fold_k, 128) MXU expansion of
        # `enc` would replace this per-segment loop with one idle-unit matmul.

        valid = jnp.logical_and(onehot, in_range)                 # (TM, W)
        loss_step = jnp.sum(jnp.where(valid, lse - x.astype(jnp.float32), 0.0))
        cnt_step = jnp.sum(valid.astype(jnp.float32))

    # Running totals kept lane-dense in a single (1, 128) f32 vreg:
    # lane 0 = loss sum, lane 1 = valid-row count.
    lane_out = jax.lax.broadcasted_iota(jnp.int32, (1, 128), 1)
    acc_ref[...] += jnp.where(lane_out == 0, loss_step,
                              jnp.where(lane_out == 1, cnt_step, 0.0))

    @pl.when(i == inner - 1)
    def _finalize():
        out_ref[...] = acc_ref[...]


def ppc_loss(contrast_logits, contrast_target, *, _tile_rows=None):
    """Mean softmax cross-entropy over rows, ignoring rows whose target is -1
    (== F.cross_entropy(contrast_logits, contrast_target, ignore_index=-1))."""
    n_rows, n_cls = contrast_logits.shape
    itemsize = jnp.dtype(contrast_logits.dtype).itemsize
    tgt = contrast_target.astype(jnp.int32)

    # Small-class lane folding: pack fold_k consecutive rows into the 128-lane
    # axis so exp/log and VPU work run on fully useful vregs.
    fold_k = 1
    if 2 <= n_cls < 128 and 128 % n_cls == 0:
        k = 128 // n_cls
        if n_rows % k == 0:
            fold_k = k

    if fold_k > 1:
        rows = n_rows // fold_k
        width = fold_k * n_cls                                    # == 128
        logits_in = contrast_logits.reshape(rows, width)          # row-major: free
        seg = jnp.arange(n_rows, dtype=jnp.int32) % fold_k
        enc = jnp.where(tgt == IGNORE_LABEL, jnp.int32(IGNORE_LABEL),
                        seg * n_cls + tgt)
        tgt_in = enc.reshape(rows, fold_k)
    else:
        rows = n_rows
        width = n_cls
        logits_in = contrast_logits
        tgt_in = tgt.reshape(rows, 1)

    vmem_cap = _vmem_capacity_bytes()                  # 128 MiB v5e/v6e, 64 MiB v7x
    vmem_limit = int(min(vmem_cap // 2, 64 * 1024 * 1024))
    tile_budget = int(min(vmem_cap // 8, 16 * 1024 * 1024))

    tile_rows = _tile_rows or _pick_tile_rows(rows, width, itemsize, tile_budget)
    total_blocks = pl.cdiv(rows, tile_rows)
    num_slices = max(1, min(_num_core_slices(), total_blocks))
    inner = pl.cdiv(total_blocks, num_slices)
    last_block = total_blocks - 1

    def block_idx(c, i):
        # Round-robin over real blocks; the clamp only fires for the at-most
        # (num_slices-1) leftover steps, which the kernel fully masks out.
        return (jnp.minimum(i * num_slices + c, last_block), 0)

    kernel = functools.partial(
        _ppc_kernel, rows=rows, tile_rows=tile_rows, num_slices=num_slices,
        n_cls=n_cls, fold_k=fold_k)

    out = pl.pallas_call(
        kernel,
        out_shape=jax.ShapeDtypeStruct((1, num_slices * 128), jnp.float32),
        grid_spec=pltpu.PrefetchScalarGridSpec(
            num_scalar_prefetch=0,
            grid=(num_slices, inner),
            in_specs=[
                pl.BlockSpec((tile_rows, width), block_idx),
                pl.BlockSpec((tile_rows, tgt_in.shape[1]), block_idx),
            ],
            out_specs=pl.BlockSpec((1, 128), lambda c, i: (0, c)),
            scratch_shapes=[pltpu.VMEM((1, 128), jnp.float32)],
        ),
        compiler_params=pltpu.CompilerParams(
            dimension_semantics=("parallel", "arbitrary"),
            vmem_limit_bytes=vmem_limit,
        ),
        cost_estimate=pl.CostEstimate(
            flops=8 * n_rows * n_cls,
            transcendentals=n_rows * n_cls + n_rows,
            bytes_accessed=n_rows * n_cls * itemsize + n_rows * 4
                           + num_slices * 512,
        ),
    )(logits_in, tgt_in)

    partials = out.reshape(num_slices, 128)
    loss_sum = jnp.sum(partials[:, 0])
    valid_cnt = jnp.sum(partials[:, 1])
    # NaN when every row is ignored -- matches F.cross_entropy's behaviour.
    return (loss_sum / valid_cnt).astype(jnp.float32)


def _reference(contrast_logits, contrast_target):
    """Pure-JAX reference for checking."""
    logits = contrast_logits.astype(jnp.float32)
    tgt = contrast_target.astype(jnp.int32)
    logp = jax.nn.log_softmax(logits, axis=-1)
    safe_tgt = jnp.where(tgt == IGNORE_LABEL, 0, tgt)
    nll = -jnp.take_along_axis(logp, safe_tgt[:, None], axis=-1)[:, 0]
    valid = (tgt != IGNORE_LABEL).astype(jnp.float32)
    return jnp.sum(nll * valid) / jnp.sum(valid)


if __name__ == "__main__":
    key = jax.random.PRNGKey(0)

    def make_case(k, n, c, p_ignore=0.25):
        k1, k2, k3 = jax.random.split(k, 3)
        logits = jax.random.normal(k1, (n, c), dtype=jnp.float32)
        t = jax.random.randint(k2, (n,), 0, c, dtype=jnp.int32)
        ign = jax.random.bernoulli(k3, p_ignore, (n,))
        return logits, jnp.where(ign, IGNORE_LABEL, t)

    k1, k2, k3 = jax.random.split(key, 3)

    # 1) lane-folded path (C divides 128), single tile, jitted.
    logits, tgt = make_case(k1, 64, 16)
    loss = jax.jit(ppc_loss)(logits, tgt)
    jax.block_until_ready(loss)
    ref = _reference(logits, tgt)
    assert jnp.allclose(loss, ref, rtol=1e-4, atol=1e-4), (loss, ref)

    # 2) generic lane-padded path (C does not divide 128).
    logits, tgt = make_case(k2, 48, 20)
    loss = ppc_loss(logits, tgt)
    jax.block_until_ready(loss)
    ref = _reference(logits, tgt)
    assert jnp.allclose(loss, ref, rtol=1e-4, atol=1e-4), (loss, ref)

    # 3) folded path with several row tiles, a partial last tile and (on
    #    multi-core parts) round-robin slice assignment + clamped-duplicate
    #    masking, forced via a small tile override.
    logits, tgt = make_case(k3, 160, 16)
    loss = ppc_loss(logits, tgt, _tile_rows=8)
    jax.block_until_ready(loss)
    ref = _reference(logits, tgt)
    assert jnp.allclose(loss, ref, rtol=1e-4, atol=1e-4), (loss, ref)

    print("KERNEL_OK")
</pallas_src>

<mosaic_0001>
module attributes {stable_mosaic.version = 11 : i64} {
  func.func @_ppc_kernel(%arg0: i32, %arg1: i32, %arg2: memref<8x128xf32, #tpu.memory_space<vmem>>, %arg3: memref<8x8xi32, #tpu.memory_space<vmem>>, %arg4: memref<1x128xf32, #tpu.memory_space<vmem>>, %arg5: memref<1x128xf32, #tpu.memory_space<vmem>>) attributes {dimension_semantics = [#tpu.dimension_semantics<parallel>, #tpu.dimension_semantics<arbitrary>], iteration_bounds = array<i64: 1, 1>, scalar_prefetch = 0 : i64, scratch_operands = 1 : i64, tpu.core_type = #tpu.core_type<tc>, window_params = [{transform_indices = @transform_0, window_bounds = array<i64: 8, 128>}, {transform_indices = @transform_1, window_bounds = array<i64: 8, 8>}, {transform_indices = @transform_2, window_bounds = array<i64: 1, 128>}]} {
    %c0_i32 = arith.constant 0 : i32
    %0 = arith.cmpi eq, %arg1, %c0_i32 : i32
    %1 = arith.extui %0 : i1 to i32
    %c0_i32_0 = arith.constant 0 : i32
    %2 = arith.cmpi ne, %1, %c0_i32_0 : i32
    scf.if %2 {
      %cst_42 = arith.constant 0.000000e+00 : f32
      %168 = vector.broadcast %cst_42 : f32 to vector<1x128xf32>
      %c0_43 = arith.constant 0 : index
      %c0_44 = arith.constant 0 : index
      %169 = vector.load %arg5[%c0_43, %c0_44] : memref<1x128xf32, #tpu.memory_space<vmem>>, vector<1x128xf32>
      tpu.vector_store %arg5[%c0_43, %c0_44], %168 {strides = array<i32>} : memref<1x128xf32, #tpu.memory_space<vmem>>, vector<1x128xf32>,
    } else {
    }
    %c1_i32 = arith.constant 1 : i32
    %3 = arith.muli %arg1, %c1_i32 : i32
    %4 = arith.addi %3, %arg0 : i32
    %c8_i32 = arith.constant 8 : i32
    %5 = arith.muli %4, %c8_i32 : i32
    %6 = tpu.iota {dimensions = array<i32: 0>} : vector<8x1xi32>
    %7 = vector.broadcast %5 : i32 to vector<8x1xi32>
    %8 = arith.addi %7, %6 : vector<8x1xi32>
    %c8_i32_1 = arith.constant 8 : i32
    %9 = vector.broadcast %c8_i32_1 : i32 to vector<8x1xi32>
    %10 = arith.cmpi slt, %8, %9 : vector<8x1xi32>
    %c0 = arith.constant 0 : index
    %c0_2 = arith.constant 0 : index
    %11 = vector.load %arg2[%c0, %c0_2] : memref<8x128xf32, #tpu.memory_space<vmem>>, vector<8x128xf32>
    %12 = tpu.iota {dimensions = array<i32: 1>} : vector<1x128xi32>
    %c1_i32_3 = arith.constant 1 : i32
    %13 = tpu.dynamic_rotate %11 by %c1_i32_3 dim 1 : vector<8x128xf32>, i32 -> vector<8x128xf32>
    %c127_i32 = arith.constant 127 : i32
    %14 = tpu.dynamic_rotate %11 by %c127_i32 dim 1 : vector<8x128xf32>, i32 -> vector<8x128xf32>
    %c1_i32_4 = arith.constant 1 : i32
    %15 = tpu.dynamic_rotate %12 by %c1_i32_4 dim 1 : vector<1x128xi32>, i32 -> vector<1x128xi32>
    %c1_i32_5 = arith.constant 1 : i32
    %16 = vector.broadcast %c1_i32_5 : i32 to vector<1x128xi32>
    %17 = arith.xori %12, %16 : vector<1x128xi32>
    %18 = arith.cmpi eq, %15, %17 : vector<1x128xi32>
    %19 = vector.shape_cast %18 : vector<1x128xi1> to vector<1x128xi1>
    %20 = vector.broadcast %19 : vector<1x128xi1> to vector<8x128xi1>
    %21 = arith.select %20, %13, %14 : vector<8x128xi1>, vector<8x128xf32>
    %22 = arith.maximumf %11, %21 : vector<8x128xf32>
    %c2_i32 = arith.constant 2 : i32
    %23 = tpu.dynamic_rotate %22 by %c2_i32 dim 1 : vector<8x128xf32>, i32 -> vector<8x128xf32>
    %c126_i32 = arith.constant 126 : i32
    %24 = tpu.dynamic_rotate %22 by %c126_i32 dim 1 : vector<8x128xf32>, i32 -> vector<8x128xf32>
    %c2_i32_6 = arith.constant 2 : i32
    %25 = tpu.dynamic_rotate %12 by %c2_i32_6 dim 1 : vector<1x128xi32>, i32 -> vector<1x128xi32>
    %c2_i32_7 = arith.constant 2 : i32
    %26 = vector.broadcast %c2_i32_7 : i32 to vector<1x128xi32>
    %27 = arith.xori %12, %26 : vector<1x128xi32>
    %28 = arith.cmpi eq, %25, %27 : vector<1x128xi32>
    %29 = vector.shape_cast %28 : vector<1x128xi1> to vector<1x128xi1>
    %30 = vector.broadcast %29 : vector<1x128xi1> to vector<8x128xi1>
    %31 = arith.select %30, %23, %24 : vector<8x128xi1>, vector<8x128xf32>
    %32 = arith.maximumf %22, %31 : vector<8x128xf32>
    %c4_i32 = arith.constant 4 : i32
    %33 = tpu.dynamic_rotate %32 by %c4_i32 dim 1 : vector<8x128xf32>, i32 -> vector<8x128xf32>
    %c124_i32 = arith.constant 124 : i32
    %34 = tpu.dynamic_rotate %32 by %c124_i32 dim 1 : vector<8x128xf32>, i32 -> vector<8x128xf32>
    %c4_i32_8 = arith.constant 4 : i32
    %35 = tpu.dynamic_rotate %12 by %c4_i32_8 dim 1 : vector<1x128xi32>, i32 -> vector<1x128xi32>
    %c4_i32_9 = arith.constant 4 : i32
    %36 = vector.broadcast %c4_i32_9 : i32 to vector<1x128xi32>
    %37 = arith.xori %12, %36 : vector<1x128xi32>
    %38 = arith.cmpi eq, %35, %37 : vector<1x128xi32>
    %39 = vector.shape_cast %38 : vector<1x128xi1> to vector<1x128xi1>
    %40 = vector.broadcast %39 : vector<1x128xi1> to vector<8x128xi1>
    %41 = arith.select %40, %33, %34 : vector<8x128xi1>, vector<8x128xf32>
    %42 = arith.maximumf %32, %41 : vector<8x128xf32>
    %c8_i32_10 = arith.constant 8 : i32
    %43 = tpu.dynamic_rotate %42 by %c8_i32_10 dim 1 : vector<8x128xf32>, i32 -> vector<8x128xf32>
    %c120_i32 = arith.constant 120 : i32
    %44 = tpu.dynamic_rotate %42 by %c120_i32 dim 1 : vector<8x128xf32>, i32 -> vector<8x128xf32>
    %c8_i32_11 = arith.constant 8 : i32
    %45 = tpu.dynamic_rotate %12 by %c8_i32_11 dim 1 : vector<1x128xi32>, i32 -> vector<1x128xi32>
    %c8_i32_12 = arith.constant 8 : i32
    %46 = vector.broadcast %c8_i32_12 : i32 to vector<1x128xi32>
    %47 = arith.xori %12, %46 : vector<1x128xi32>
    %48 = arith.cmpi eq, %45, %47 : vector<1x128xi32>
    %49 = vector.shape_cast %48 : vector<1x128xi1> to vector<1x128xi1>
    %50 = vector.broadcast %49 : vector<1x128xi1> to vector<8x128xi1>
    %51 = arith.select %50, %43, %44 : vector<8x128xi1>, vector<8x128xf32>
    %52 = arith.maximumf %42, %51 : vector<8x128xf32>
    %53 = arith.subf %11, %52 : vector<8x128xf32>
    %54 = math.exp %53 : vector<8x128xf32>
    %c1_i32_13 = arith.constant 1 : i32
    %55 = tpu.dynamic_rotate %54 by %c1_i32_13 dim 1 : vector<8x128xf32>, i32 -> vector<8x128xf32>
    %c127_i32_14 = arith.constant 127 : i32
    %56 = tpu.dynamic_rotate %54 by %c127_i32_14 dim 1 : vector<8x128xf32>, i32 -> vector<8x128xf32>
    %c1_i32_15 = arith.constant 1 : i32
    %57 = tpu.dynamic_rotate %12 by %c1_i32_15 dim 1 : vector<1x128xi32>, i32 -> vector<1x128xi32>
    %c1_i32_16 = arith.constant 1 : i32
    %58 = vector.broadcast %c1_i32_16 : i32 to vector<1x128xi32>
    %59 = arith.xori %12, %58 : vector<1x128xi32>
    %60 = arith.cmpi eq, %57, %59 : vector<1x128xi32>
    %61 = vector.shape_cast %60 : vector<1x128xi1> to vector<1x128xi1>
    %62 = vector.broadcast %61 : vector<1x128xi1> to vector<8x128xi1>
    %63 = arith.select %62, %55, %56 : vector<8x128xi1>, vector<8x128xf32>
    %64 = arith.addf %54, %63 : vector<8x128xf32>
    %c2_i32_17 = arith.constant 2 : i32
    %65 = tpu.dynamic_rotate %64 by %c2_i32_17 dim 1 : vector<8x128xf32>, i32 -> vector<8x128xf32>
    %c126_i32_18 = arith.constant 126 : i32
    %66 = tpu.dynamic_rotate %64 by %c126_i32_18 dim 1 : vector<8x128xf32>, i32 -> vector<8x128xf32>
    %c2_i32_19 = arith.constant 2 : i32
    %67 = tpu.dynamic_rotate %12 by %c2_i32_19 dim 1 : vector<1x128xi32>, i32 -> vector<1x128xi32>
    %c2_i32_20 = arith.constant 2 : i32
    %68 = vector.broadcast %c2_i32_20 : i32 to vector<1x128xi32>
    %69 = arith.xori %12, %68 : vector<1x128xi32>
    %70 = arith.cmpi eq, %67, %69 : vector<1x128xi32>
    %71 = vector.shape_cast %70 : vector<1x128xi1> to vector<1x128xi1>
    %72 = vector.broadcast %71 : vector<1x128xi1> to vector<8x128xi1>
    %73 = arith.select %72, %65, %66 : vector<8x128xi1>, vector<8x128xf32>
    %74 = arith.addf %64, %73 : vector<8x128xf32>
    %c4_i32_21 = arith.constant 4 : i32
    %75 = tpu.dynamic_rotate %74 by %c4_i32_21 dim 1 : vector<8x128xf32>, i32 -> vector<8x128xf32>
    %c124_i32_22 = arith.constant 124 : i32
    %76 = tpu.dynamic_rotate %74 by %c124_i32_22 dim 1 : vector<8x128xf32>, i32 -> vector<8x128xf32>
    %c4_i32_23 = arith.constant 4 : i32
    %77 = tpu.dynamic_rotate %12 by %c4_i32_23 dim 1 : vector<1x128xi32>, i32 -> vector<1x128xi32>
    %c4_i32_24 = arith.constant 4 : i32
    %78 = vector.broadcast %c4_i32_24 : i32 to vector<1x128xi32>
    %79 = arith.xori %12, %78 : vector<1x128xi32>
    %80 = arith.cmpi eq, %77, %79 : vector<1x128xi32>
    %81 = vector.shape_cast %80 : vector<1x128xi1> to vector<1x128xi1>
    %82 = vector.broadcast %81 : vector<1x128xi1> to vector<8x128xi1>
    %83 = arith.select %82, %75, %76 : vector<8x128xi1>, vector<8x128xf32>
    %84 = arith.addf %74, %83 : vector<8x128xf32>
    %c8_i32_25 = arith.constant 8 : i32
    %85 = tpu.dynamic_rotate %84 by %c8_i32_25 dim 1 : vector<8x128xf32>, i32 -> vector<8x128xf32>
    %c120_i32_26 = arith.constant 120 : i32
    %86 = tpu.dynamic_rotate %84 by %c120_i32_26 dim 1 : vector<8x128xf32>, i32 -> vector<8x128xf32>
    %c8_i32_27 = arith.constant 8 : i32
    %87 = tpu.dynamic_rotate %12 by %c8_i32_27 dim 1 : vector<1x128xi32>, i32 -> vector<1x128xi32>
    %c8_i32_28 = arith.constant 8 : i32
    %88 = vector.broadcast %c8_i32_28 : i32 to vector<1x128xi32>
    %89 = arith.xori %12, %88 : vector<1x128xi32>
    %90 = arith.cmpi eq, %87, %89 : vector<1x128xi32>
    %91 = vector.shape_cast %90 : vector<1x128xi1> to vector<1x128xi1>
    %92 = vector.broadcast %91 : vector<1x128xi1> to vector<8x128xi1>
    %93 = arith.select %92, %85, %86 : vector<8x128xi1>, vector<8x128xf32>
    %94 = arith.addf %84, %93 : vector<8x128xf32>
    %95 = math.log %94 : vector<8x128xf32>
    %96 = arith.addf %95, %52 : vector<8x128xf32>
    %c0_29 = arith.constant 0 : index
    %c0_30 = arith.constant 0 : index
    %97 = vector.load %arg3[%c0_29, %c0_30] : memref<8x8xi32, #tpu.memory_space<vmem>>, vector<8x8xi32>
    %98 = vector.extract_strided_slice %97 {offsets = [0, 0], sizes = [8, 1], strides = [1, 1]} : vector<8x8xi32> to vector<8x1xi32>
    %99 = vector.broadcast %12 : vector<1x128xi32> to vector<8x128xi32>
    %100 = vector.broadcast %98 : vector<8x1xi32> to vector<8x128xi32>
    %101 = arith.cmpi eq, %99, %100 : vector<8x128xi32>
    %102 = vector.extract_strided_slice %97 {offsets = [0, 1], sizes = [8, 1], strides = [1, 1]} : vector<8x8xi32> to vector<8x1xi32>
    %103 = vector.broadcast %12 : vector<1x128xi32> to vector<8x128xi32>
    %104 = vector.broadcast %102 : vector<8x1xi32> to vector<8x128xi32>
    %105 = arith.cmpi eq, %103, %104 : vector<8x128xi32>
    %106 = arith.ori %101, %105 : vector<8x128xi1>
    %107 = vector.extract_strided_slice %97 {offsets = [0, 2], sizes = [8, 1], strides = [1, 1]} : vector<8x8xi32> to vector<8x1xi32>
    %108 = vector.broadcast %12 : vector<1x128xi32> to vector<8x128xi32>
    %109 = vector.broadcast %107 : vector<8x1xi32> to vector<8x128xi32>
    %110 = arith.cmpi eq, %108, %109 : vector<8x128xi32>
    %111 = arith.ori %106, %110 : vector<8x128xi1>
    %112 = vector.extract_strided_slice %97 {offsets = [0, 3], sizes = [8, 1], strides = [1, 1]} : vector<8x8xi32> to vector<8x1xi32>
    %113 = vector.broadcast %12 : vector<1x128xi32> to vector<8x128xi32>
    %114 = vector.broadcast %112 : vector<8x1xi32> to vector<8x128xi32>
    %115 = arith.cmpi eq, %113, %114 : vector<8x128xi32>
    %116 = arith.ori %111, %115 : vector<8x128xi1>
    %117 = vector.extract_strided_slice %97 {offsets = [0, 4], sizes = [8, 1], strides = [1, 1]} : vector<8x8xi32> to vector<8x1xi32>
    %118 = vector.broadcast %12 : vector<1x128xi32> to vector<8x128xi32>
    %119 = vector.broadcast %117 : vector<8x1xi32> to vector<8x128xi32>
    %120 = arith.cmpi eq, %118, %119 : vector<8x128xi32>
    %121 = arith.ori %116, %120 : vector<8x128xi1>
    %122 = vector.extract_strided_slice %97 {offsets = [0, 5], sizes = [8, 1], strides = [1, 1]} : vector<8x8xi32> to vector<8x1xi32>
    %123 = vector.broadcast %12 : vector<1x128xi32> to vector<8x128xi32>
    %124 = vector.broadcast %122 : vector<8x1xi32> to vector<8x128xi32>
    %125 = arith.cmpi eq, %123, %124 : vector<8x128xi32>
    %126 = arith.ori %121, %125 : vector<8x128xi1>
    %127 = vector.extract_strided_slice %97 {offsets = [0, 6], sizes = [8, 1], strides = [1, 1]} : vector<8x8xi32> to vector<8x1xi32>
    %128 = vector.broadcast %12 : vector<1x128xi32> to vector<8x128xi32>
    %129 = vector.broadcast %127 : vector<8x1xi32> to vector<8x128xi32>
    %130 = arith.cmpi eq, %128, %129 : vector<8x128xi32>
    %131 = arith.ori %126, %130 : vector<8x128xi1>
    %132 = vector.extract_strided_slice %97 {offsets = [0, 7], sizes = [8, 1], strides = [1, 1]} : vector<8x8xi32> to vector<8x1xi32>
    %133 = vector.broadcast %12 : vector<1x128xi32> to vector<8x128xi32>
    %134 = vector.broadcast %132 : vector<8x1xi32> to vector<8x128xi32>
    %135 = arith.cmpi eq, %133, %134 : vector<8x128xi32>
    %136 = arith.ori %131, %135 : vector<8x128xi1>
    %137 = vector.broadcast %10 : vector<8x1xi1> to vector<8x128xi1>
    %138 = arith.andi %136, %137 : vector<8x128xi1>
    %139 = arith.subf %96, %11 : vector<8x128xf32>
    %cst = arith.constant 0.000000e+00 : f32
    %140 = vector.broadcast %cst : f32 to vector<8x128xf32>
    %141 = arith.select %138, %139, %140 : vector<8x128xi1>, vector<8x128xf32>
    %142 = vector.shape_cast %141 : vector<8x128xf32> to vector<1x8x128xf32>
    %cst_31 = arith.constant dense<0.000000e+00> : vector<1xf32>
    %143 = vector.multi_reduction <add>, %142, %cst_31 [1, 2] : vector<1x8x128xf32> to vector<1xf32>
    %144 = vector.shape_cast %143 : vector<1xf32> to vector<1x1x1xf32>
    %145 = vector.extract %144[0, 0, 0] : f32 from vector<1x1x1xf32>
    %146 = arith.extui %138 : vector<8x128xi1> to vector<8x128xi32>
    %147 = arith.sitofp %146 : vector<8x128xi32> to vector<8x128xf32>
    %148 = vector.shape_cast %147 : vector<8x128xf32> to vector<1x8x128xf32>
    %cst_32 = arith.constant dense<0.000000e+00> : vector<1xf32>
    %149 = vector.multi_reduction <add>, %148, %cst_32 [1, 2] : vector<1x8x128xf32> to vector<1xf32>
    %150 = vector.shape_cast %149 : vector<1xf32> to vector<1x1x1xf32>
    %151 = vector.extract %150[0, 0, 0] : f32 from vector<1x1x1xf32>
    %152 = tpu.iota {dimensions = array<i32: 1>} : vector<1x128xi32>
    %c0_33 = arith.constant 0 : index
    %c0_34 = arith.constant 0 : index
    %153 = vector.load %arg5[%c0_33, %c0_34] : memref<1x128xf32, #tpu.memory_space<vmem>>, vector<1x128xf32>
    %c0_i32_35 = arith.constant 0 : i32
    %154 = vector.broadcast %c0_i32_35 : i32 to vector<1x128xi32>
    %155 = arith.cmpi eq, %152, %154 : vector<1x128xi32>
    %c1_i32_36 = arith.constant 1 : i32
    %156 = vector.broadcast %c1_i32_36 : i32 to vector<1x128xi32>
    %157 = arith.cmpi eq, %152, %156 : vector<1x128xi32>
    %cst_37 = arith.constant 0.000000e+00 : f32
    %158 = vector.broadcast %151 : f32 to vector<1x128xf32>
    %159 = vector.broadcast %cst_37 : f32 to vector<1x128xf32>
    %160 = arith.select %157, %158, %159 : vector<1x128xi1>, vector<1x128xf32>
    %161 = vector.broadcast %145 : f32 to vector<1x128xf32>
    %162 = arith.select %155, %161, %160 : vector<1x128xi1>, vector<1x128xf32>
    %163 = arith.addf %153, %162 : vector<1x128xf32>
    %c0_38 = arith.constant 0 : index
    %c0_39 = arith.constant 0 : index
    %164 = vector.load %arg5[%c0_38, %c0_39] : memref<1x128xf32, #tpu.memory_space<vmem>>, vector<1x128xf32>
    tpu.vector_store %arg5[%c0_38, %c0_39], %163 {strides = array<i32>} : memref<1x128xf32, #tpu.memory_space<vmem>>, vector<1x128xf32>,
    %c0_i32_40 = arith.constant 0 : i32
    %165 = arith.cmpi eq, %arg1, %c0_i32_40 : i32
    %166 = arith.extui %165 : i1 to i32
    %c0_i32_41 = arith.constant 0 : i32
    %167 = arith.cmpi ne, %166, %c0_i32_41 : i32
    scf.if %167 {
      %c0_42 = arith.constant 0 : index
      %c0_43 = arith.constant 0 : index
      %168 = vector.load %arg5[%c0_42, %c0_43] : memref<1x128xf32, #tpu.memory_space<vmem>>, vector<1x128xf32>
      %c0_44 = arith.constant 0 : index
      %c0_45 = arith.constant 0 : index
      %169 = vector.load %arg4[%c0_44, %c0_45] : memref<1x128xf32, #tpu.memory_space<vmem>>, vector<1x128xf32>
      tpu.vector_store %arg4[%c0_44, %c0_45], %168 {strides = array<i32>} : memref<1x128xf32, #tpu.memory_space<vmem>>, vector<1x128xf32>,
    } else {
    }
    return
  }
  func.func @transform_0(%arg0: i32, %arg1: i32) -> (i32, i32) {
    %c1_i32 = arith.constant 1 : i32
    %0 = arith.muli %arg1, %c1_i32 : i32
    %1 = arith.addi %0, %arg0 : i32
    %c0_i32 = arith.constant 0 : i32
    %2 = arith.minsi %1, %c0_i32 : i32
    %c0_i32_0 = arith.constant 0 : i32
    %c0_i32_1 = arith.constant 0 : i32
    return %2, %c0_i32_0 : i32, i32
  }
  func.func @transform_1(%arg0: i32, %arg1: i32) -> (i32, i32) {
    %c1_i32 = arith.constant 1 : i32
    %0 = arith.muli %arg1, %c1_i32 : i32
    %1 = arith.addi %0, %arg0 : i32
    %c0_i32 = arith.constant 0 : i32
    %2 = arith.minsi %1, %c0_i32 : i32
    %c0_i32_0 = arith.constant 0 : i32
    %c0_i32_1 = arith.constant 0 : i32
    return %2, %c0_i32_0 : i32, i32
  }
  func.func @transform_2(%arg0: i32, %arg1: i32) -> (i32, i32) {
    %c0_i32 = arith.constant 0 : i32
    %c0_i32_0 = arith.constant 0 : i32
    return %c0_i32, %arg0 : i32, i32
  }
}

</mosaic_0001>

<bundles_post_ra>
// kernel: ppc_loss.1
= control target key start
LH: loop header
LB: loop body
LE: loop exit
PB: predicated region body
PF: predicated region fallthrough
CT: control target
= control target key end

     0   :  { %v78_v0 = vlaneseq  ;;  %v304_v2 = vmov 0   ;;  %s305_s11 = smov 127   ;;  %s306_s12 = smov 1   ;;  %v313_v45 = vmov 1   ;;  %v314_v55 = vmov 2   ;;  %s428_s0 = inlined_call_operand.vmem [shape: f32[8,128], index: 0, kind: input, shape index: {}]   ;;  %s429_s1 = inlined_call_operand.vmem [shape: s32[8,8], index: 1, kind: input, shape index: {}]   ;;  %s430_s2 = inlined_call_operand.vmem [shape: f32[1,128], index: 2, kind: output, shape index: {}]  }
   0x1   :  { %v339_v1 = vld [vmem:[%s428_s0] sm:$0xff]  ;;  %291 = vset.pattern.permute.xlu0 %v304_v2  ;;  %s307_s13 = smov 2   ;;  %s308_s0 = smov 126   ;;  %292 = vset.pattern.permute.xlu1 %v313_v45  ;;  %v315_v56 = vmov 3   ;;  %v316_v57 = vmov 4   ;;  %v317_v62 = vmov 5  }
   0x2   :  { %v341_v3 = vand.u32 127, %v78_v0  ;;  %82 = vrot.lane.b32.xlu1 %v339_v1, %s305_s11  ;;  %v90_v4 = vshrl.u32 %v78_v0, 7  ;;  %s309_s14 = smov 4   ;;  %s310_s15 = smov 124   ;;  %v174_v54 = vld [vmem:[%s429_s1] sm:$0xff]  ;;  %v318_v63 = vmov 6  }
   0x3   :  { %s311_s16 = smov 8   ;;  %s312_s17 = smov 120   ;;  %v319_v0 = vmov 7  }
   0x4   :  { %84 = vrot.lane.b32.xlu0 %v341_v3, %s306_s12  ;;  %v86_v5 = vxor.u32 1, %v341_v3  ;;  %v91_v6 = vsub.s32 0, %v90_v4  ;;  %v102_v15 = vxor.u32 2, %v341_v3  ;;  %v118_v24 = vxor.u32 4, %v341_v3 }
   0x5   :  { %v134_v33 = vxor.u32 8, %v341_v3 }
   0x6   :  { %100 = vrot.lane.b32.xlu1 %v341_v3, %s307_s13 }
   0x8   :  { %80 = vrot.lane.b32.xlu0 %v339_v1, %s306_s12 }
  0x74   :  { %v83_v10 = vpop.permute.xlu1 %82 }
  0x76   :  { %v85_v7 = vpop.permute.xlu0 %84 }
  0x77   :  { %vm87_vm0 = vcmp.eq.s32.totalorder %v85_v7, %v86_v5 }
  0x78   :  { %v88_v8 = vsel %vm87_vm0, 1, %v304_v2  ;;  %v101_v16 = vpop.permute.xlu1 %100 }
  0x79   :  { %v92_v9 = vrot.slane %v88_v8, %v91_v6  ;;  %vm103_vm2 = vcmp.eq.s32.totalorder %v101_v16, %v102_v15 }
  0x7a   :  { %v81_v11 = vpop.permute.xlu0 %80  ;;  %v104_v17 = vsel %vm103_vm2, 1, %v304_v2 }
  0x7b   :  { %vm352_vm1 = vcmp.eq.s32.totalorder %v92_v9, 1  ;;  %v108_v18 = vrot.slane %v104_v17, %v91_v6 }
  0x7c   :  { %v94_v13 = vsel %vm352_vm1, %v81_v11, %v83_v10 }
  0x7d   :  { %v95_v14 = vmax.f32 %v339_v1, %v94_v13  ;;  %vm364_vm3 = vcmp.eq.s32.totalorder %v108_v18, 1 }
  0x7f   :  { %98 = vrot.lane.b32.xlu1 %v95_v14, %s308_s0  ;;  %96 = vrot.lane.b32.xlu0 %v95_v14, %s307_s13 }
  0x83   :  { %116 = vrot.lane.b32.xlu0 %v341_v3, %s309_s14 }
  0xf1   :  { %v99_v20 = vpop.permute.xlu1 %98  ;;  %v97_v21 = vpop.permute.xlu0 %96 }
  0xf2   :  { %v110_v22 = vsel %vm364_vm3, %v97_v21, %v99_v20 }
  0xf3   :  { %v111_v23 = vmax.f32 %v95_v14, %v110_v22 }
  0xf5   :  { %114 = vrot.lane.b32.xlu0 %v111_v23, %s310_s15  ;;  %112 = vrot.lane.b32.xlu1 %v111_v23, %s309_s14  ;;  %v117_v25 = vpop.permute.xlu0 %116 }
  0xf6   :  { %vm119_vm4 = vcmp.eq.s32.totalorder %v117_v25, %v118_v24 }
  0xf7   :  { %v120_v26 = vsel %vm119_vm4, 1, %v304_v2 }
  0xf8   :  { %v124_v27 = vrot.slane %v120_v26, %v91_v6 }
  0xf9   :  { %132 = vrot.lane.b32.xlu1 %v341_v3, %s311_s16 }
  0xfa   :  { %vm375_vm5 = vcmp.eq.s32.totalorder %v124_v27, 1 }
 0x167   :  { %v113_v29 = vpop.permute.xlu1 %112  ;;  %v115_v30 = vpop.permute.xlu0 %114 }
 0x168   :  { %v126_v31 = vsel %vm375_vm5, %v113_v29, %v115_v30 }
 0x169   :  { %v127_v32 = vmax.f32 %v111_v23, %v126_v31 }
 0x16b   :  { %130 = vrot.lane.b32.xlu1 %v127_v32, %s312_s17  ;;  %128 = vrot.lane.b32.xlu0 %v127_v32, %s311_s16  ;;  %v133_v34 = vpop.permute.xlu1 %132 }
 0x16c   :  { %vm135_vm6 = vcmp.eq.s32.totalorder %v133_v34, %v134_v33 }
 0x16d   :  { %v136_v35 = vsel %vm135_vm6, 1, %v304_v2  ;;  %v320_v2 = vmov 0.0  }
 0x16e   :  { %v140_v36 = vrot.slane %v136_v35, %v91_v6  ;;  %69 = vst [vmem:[#allocation2] sm:$0x1] %v320_v2 }
 0x170   :  { %vm384_vm7 = vcmp.eq.s32.totalorder %v140_v36, 1 }
 0x175   :  { %v239_v36 = vld [vmem:[#allocation2] sm:$0x1] }
 0x1dd   :  { %v131_v38 = vpop.permute.xlu1 %130  ;;  %v129_v39 = vpop.permute.xlu0 %128 }
 0x1de   :  { %v142_v40 = vsel %vm384_vm7, %v129_v39, %v131_v38 }
 0x1df   :  { %v390_v41 = vmax.f32 %v127_v32, %v142_v40 }
 0x1e1   :  { %v144_v42 = vsub.f32 %v339_v1, %v390_v41 }
 0x1e3   :  { %v145_v43 = vmul.f32 1.442695, %v144_v42 }
 0x1e5   :  { %300 = vpow2.f32 %v145_v43 }
 0x1ef   :  { %v301_v44 = vpop.eup %300 }
 0x1f0   :  { %149 = vrot.lane.b32.xlu1 %v301_v44, %s305_s11  ;;  %147 = vrot.lane.b32.xlu0 %v301_v44, %s306_s12 }
 0x262   :  { %v150_v46 = vpop.permute.xlu1 %149  ;;  %v148_v47 = vpop.permute.xlu0 %147 }
 0x263   :  { %v151_v48 = vsel %vm352_vm1, %v148_v47, %v150_v46 }
 0x264   :  { %v152_v49 = vadd.f32 %v301_v44, %v151_v48 }
 0x266   :  { %155 = vrot.lane.b32.xlu1 %v152_v49, %s308_s0  ;;  %153 = vrot.lane.b32.xlu0 %v152_v49, %s307_s13 }
 0x2d8   :  { %v156_v50 = vpop.permute.xlu1 %155  ;;  %v154_v51 = vpop.permute.xlu0 %153 }
 0x2d9   :  { %v157_v52 = vsel %vm364_vm3, %v154_v51, %v156_v50 }
 0x2da   :  { %v158_v53 = vadd.f32 %v157_v52, %v152_v49 }
 0x2dc   :  { %161 = vrot.lane.b32.xlu1 %v158_v53, %s310_s15  ;;  %159 = vrot.lane.b32.xlu0 %v158_v53, %s309_s14 }
 0x2e0   :  { %180 = vperm.xlu1 %292, %v174_v54   ;;  %176 = vperm.xlu0 %291, %v174_v54  }
 0x2e4   :  { %293 = vset.pattern.permute.xlu1 %v314_v55  ;;  %294 = vset.pattern.permute.xlu0 %v315_v56 }
 0x2e5   :  { %185 = vperm.xlu1 %293, %v174_v54  }
 0x2e9   :  { %295 = vset.pattern.permute.xlu1 %v316_v57 }
 0x34e   :  { %v162_v58 = vpop.permute.xlu1 %161  ;;  %v160_v59 = vpop.permute.xlu0 %159 }
 0x34f   :  { %v163_v60 = vsel %vm375_vm5, %v160_v59, %v162_v58 }
 0x350   :  { %v164_v61 = vadd.f32 %v163_v60, %v158_v53 }
 0x352   :  { %167 = vrot.lane.b32.xlu1 %v164_v61, %s312_s17  ;;  %165 = vrot.lane.b32.xlu0 %v164_v61, %s311_s16 }
 0x356   :  { %195 = vperm.xlu1 %295, %v174_v54   ;;  %190 = vperm.xlu0 %294, %v174_v54  }
 0x35a   :  { %296 = vset.pattern.permute.xlu1 %v317_v62  ;;  %297 = vset.pattern.permute.xlu0 %v318_v63 }
 0x35b   :  { %200 = vperm.xlu1 %296, %v174_v54   ;;  %205 = vperm.xlu0 %297, %v174_v54  }
 0x35f   :  { %298 = vset.pattern.permute.xlu1 %v319_v0  ;;  %299 = vset.pattern.permute.xlu0 %v319_v0  ;;  %v181_v4 = vpop.permute.xlu1 %180  ;;  %v177_v6 = vpop.permute.xlu0 %176 }
 0x360   :  { %210 = vperm.xlu1 %298, %v174_v54   ;;  %vm182_vm8 = vcmp.eq.s32.totalorder %v341_v3, %v181_v4  ;;  %vm178_vm9 = vcmp.eq.s32.totalorder %v341_v3, %v177_v6 }
 0x361   :  { %vm183_vm11 = vmor %vm178_vm9, %vm182_vm8  ;;  %vm240_vm8 = vcmp.eq.s32.totalorder %v341_v3, 0 }
 0x364   :  { %v186_v5 = vpop.permute.xlu1 %185 }
 0x365   :  { %vm187_vm10 = vcmp.eq.s32.totalorder %v341_v3, %v186_v5 }
 0x366   :  { %vm188_vm13 = vmor %vm183_vm11, %vm187_vm10 }
 0x3c4   :  { %v168_v7 = vpop.permute.xlu1 %167  ;;  %v166_v8 = vpop.permute.xlu0 %165 }
 0x3c5   :  { %v169_v9 = vsel %vm384_vm7, %v166_v8, %v168_v7  ;;  %vm241_vm7 = vcmp.eq.s32.totalorder %v341_v3, 1 }
 0x3c6   :  { %v170_v10 = vadd.f32 %v169_v9, %v164_v61 }
 0x3c8   :  { %302 = vlog2.f32 %v170_v10 }
 0x3d2   :  { %v303_v11 = vpop.eup %302 }
 0x3d3   :  { %v172_v14 = vmul.f32 0.6931472, %v303_v11 }
 0x3d5   :  { %v196_v12 = vpop.permute.xlu1 %195  ;;  %v191_v13 = vpop.permute.xlu0 %190  ;;  %v173_v17 = vadd.f32 %v172_v14, %v390_v41 }
 0x3d6   :  { %vm192_vm12 = vcmp.eq.s32.totalorder %v341_v3, %v191_v13  ;;  %vm197_vm14 = vcmp.eq.s32.totalorder %v341_v3, %v196_v12 }
 0x3d7   :  { %vm193_vm15 = vmor %vm188_vm13, %vm192_vm12  ;;  %v217_v19 = vsub.f32 %v173_v17, %v339_v1 }
 0x3d8   :  { %vm198_vm1 = vmor %vm193_vm15, %vm197_vm14 }
 0x3da   :  { %v201_v15 = vpop.permute.xlu1 %200  ;;  %v206_v16 = vpop.permute.xlu0 %205 }
 0x3db   :  { %vm202_vm0 = vcmp.eq.s32.totalorder %v341_v3, %v201_v15  ;;  %vm207_vm3 = vcmp.eq.s32.totalorder %v341_v3, %v206_v16 }
 0x3dc   :  { %vm203_vm2 = vmor %vm198_vm1, %vm202_vm0 }
 0x3dd   :  { %vm208_vm4 = vmor %vm203_vm2, %vm207_vm3 }
 0x3df   :  { %v211_v18 = vpop.permute.xlu1 %210 }
 0x3e0   :  { %vm212_vm5 = vcmp.eq.s32.totalorder %v341_v3, %v211_v18 }
 0x3e1   :  { %vm213_vm6 = vmor %vm208_vm4, %vm212_vm5 }
 0x3e2   :  { %v269_v20 = vsel %vm213_vm6, 1.0, %v320_v2  ;;  %v218_v21 = vsel %vm213_vm6, %v217_v19, 0.0 }
 0x3e3   :  { %230 = vadd.xlane.f32.xlu0 %v269_v20  ;;  %219 = vadd.xlane.f32.xlu1 %v218_v21 }
 0x470   :  { %v231_v22 = vpop.xlane.xlu0 %230  ;;  %v220_v23 = vpop.xlane.xlu1 %219 }
 0x471   :  { %v232_v24 = vrot.slane %v231_v22, 4  ;;  %v221_v25 = vrot.slane %v220_v23, 4 }
 0x473   :  { %v233_v26 = vadd.f32 %v232_v24, %v231_v22  ;;  %v222_v27 = vadd.f32 %v221_v25, %v220_v23 }
 0x475   :  { %v234_v28 = vrot.slane %v233_v26, 2  ;;  %v223_v29 = vrot.slane %v222_v27, 2 }
 0x477   :  { %v235_v30 = vadd.f32 %v234_v28, %v233_v26  ;;  %v224_v31 = vadd.f32 %v223_v29, %v222_v27 }
 0x479   :  { %v225_v32 = vrot.slane %v224_v31, 1  ;;  %v236_v33 = vrot.slane %v235_v30, 1 }
 0x47b   :  { %v226_v34 = vadd.f32 %v225_v32, %v224_v31  ;;  %v237_v35 = vadd.f32 %v236_v33, %v235_v30 }
 0x47d   :  { %270 = vpush %v226_v34 }
 0x47e   :  { %272 = vpush %v237_v35 }
 0x4ae   :  { %s271_s1 = spop %270 }
 0x4af   :  { %v244_v1 = vstv %s271_s1  ;;  %s273_s20 = spop %272 }
 0x4b0   :  { %v242_v37 = vstv %s273_s20 }
 0x4b1   :  { %v243_v38 = vsel %vm241_vm7, %v242_v37, 0.0 }
 0x4b2   :  { %v245_v39 = vsel %vm240_vm8, %v244_v1, %v243_v38 }
 0x4b3   :  { %v246_v40 = vadd.f32 %v245_v39, %v239_v36 }
 0x4b5   :  { %247 = vst [vmem:[#allocation2] sm:$0x1] %v246_v40 }
 0x4bc   :  { %v251_v41 = vld [vmem:[#allocation2] sm:$0x1] }
 0x4bd   :  { %252 = vst [vmem:[%s430_s2] sm:$0x1] %v251_v41 }

</bundles_post_ra>
